<compile_context>
chip_gen: v6e
topology: v6e:2x2x1
jax: 0.10.0
libtpu: 0.0.40
codegen_flags: <defaults>
</compile_context>

<pallas_src>
import math

import jax
import jax.numpy as jnp
from jax.experimental import pallas as pl
from jax.experimental.pallas import tpu as pltpu


def _cross_compress_kernel(w_ref, v_ref, e_ref, v_out_ref, e_out_ref):
    # w_ref: [8, dim]   rows: 0=vv, 1=ev, 2=ve, 3=ee, 4=bias_v, 5=bias_e, 6-7=pad
    # v_ref, e_ref, v_out_ref, e_out_ref: [TB, dim]
    v = v_ref[...].astype(jnp.float32)
    e = e_ref[...].astype(jnp.float32)
    w = w_ref[...].astype(jnp.float32)

    vv = w[0:1, :]
    ev = w[1:2, :]
    ve = w[2:3, :]
    ee = w[3:4, :]
    bv = w[4:5, :]
    be = w[5:6, :]

    # Per-row scalar reductions along dim (XLU), f32 accumulation.
    s_vv = jnp.sum(e * vv, axis=-1, keepdims=True)   # [TB, 1]  e[b]·vv
    s_ev = jnp.sum(v * ev, axis=-1, keepdims=True)   # [TB, 1]  v[b]·ev
    s_ve = jnp.sum(e * ve, axis=-1, keepdims=True)   # [TB, 1]  e[b]·ve
    s_ee = jnp.sum(v * ee, axis=-1, keepdims=True)   # [TB, 1]  v[b]·ee

    v_out_ref[...] = (v * s_vv + e * s_ev + bv).astype(v_out_ref.dtype)
    e_out_ref[...] = (v * s_ve + e * s_ee + be).astype(e_out_ref.dtype)


def _choose_block_b(B, dim, itemsize):
    """Largest batch tile (<=1024 rows) whose double-buffered working set
    (2 streaming inputs + 2 outputs, x2 buffers) fits a ~24 MiB VMEM budget,
    which is safe on v7x (64 MiB physical) and leaves headroom on v5e/v6e."""
    budget = 24 * 1024 * 1024
    max_tb = max(8, budget // (8 * dim * itemsize))
    tb = min(B, max_tb, 1024)
    if tb >= B:
        return B                      # full extent: no (8,128) divisibility needed
    return max(8, (tb // 8) * 8)      # tiled: must be a multiple of 8 sublanes


def cross_compress_unit(v, e, params, *, block_b=None):
    """v, e: [B, dim]; params: dict with vv, ev, ve, ee ([1, dim]) and
    bias_v, bias_e ([dim]). Returns (v_out, e_out), each [B, dim]."""
    B, dim = v.shape
    pdtype = params["vv"].dtype

    # Pack the six parameter rows into one sublane-aligned [8, dim] tile.
    w = jnp.zeros((8, dim), pdtype)
    w = w.at[0, :].set(params["vv"].reshape(dim))
    w = w.at[1, :].set(params["ev"].reshape(dim))
    w = w.at[2, :].set(params["ve"].reshape(dim))
    w = w.at[3, :].set(params["ee"].reshape(dim))
    w = w.at[4, :].set(params["bias_v"].reshape(dim))
    w = w.at[5, :].set(params["bias_e"].reshape(dim))

    itemsize = jnp.dtype(v.dtype).itemsize
    tb = block_b if block_b is not None else _choose_block_b(B, dim, itemsize)
    grid = (pl.cdiv(B, tb),)

    stream_spec = pl.BlockSpec((tb, dim), lambda i: (i, 0))   # v, e, outputs
    param_spec = pl.BlockSpec((8, dim), lambda i: (0, 0))     # resident params

    # Explicit VMEM sizing: tiles + params + margin, clamped to a limit that is
    # safe on every generation (v7x has only 64 MiB physical).
    tile_bytes = tb * dim * itemsize
    needed = 2 * 4 * tile_bytes + 8 * dim * jnp.dtype(pdtype).itemsize + (1 << 20)
    vmem_limit = int(min(max(2 * needed, 32 * 1024 * 1024), 48 * 1024 * 1024))

    v_out, e_out = pl.pallas_call(
        _cross_compress_kernel,
        out_shape=(jax.ShapeDtypeStruct((B, dim), v.dtype),
                   jax.ShapeDtypeStruct((B, dim), e.dtype)),
        grid=grid,
        in_specs=[param_spec, stream_spec, stream_spec],
        out_specs=(stream_spec, stream_spec),
        compiler_params=pltpu.CompilerParams(
            dimension_semantics=("parallel",),
            vmem_limit_bytes=vmem_limit),
    )(w, v, e)
    return v_out, e_out


def _init_params(key, dim, dtype=jnp.float32):
    stdv = 1.0 / math.sqrt(dim)
    keys = jax.random.split(key, 6)
    u = lambda k, shape: jax.random.uniform(k, shape, dtype, -stdv, stdv)
    return {
        "vv": u(keys[0], (1, dim)),
        "ev": u(keys[1], (1, dim)),
        "ve": u(keys[2], (1, dim)),
        "ee": u(keys[3], (1, dim)),
        "bias_v": u(keys[4], (dim,)),
        "bias_e": u(keys[5], (dim,)),
    }


def _reference(v, e, params):
    """Literal re-implementation of the PyTorch forward in plain JAX."""
    B, dim = v.shape
    c = v[:, :, None] @ e[:, None, :]                       # [B, dim, dim]
    c_t = jnp.transpose(c, (0, 2, 1))
    c = c.reshape(-1, dim)
    c_t = c_t.reshape(-1, dim)
    v_out = c @ params["vv"].T + c_t @ params["ev"].T       # [B*dim, 1]
    v_out = v_out.reshape(-1, dim) + params["bias_v"]       # [B, dim]
    e_out = c @ params["ve"].T + c_t @ params["ee"].T
    e_out = e_out.reshape(-1, dim) + params["bias_e"]
    return v_out, e_out


if __name__ == "__main__":
    B, dim = 16, 32
    key = jax.random.PRNGKey(0)
    k_v, k_e, k_p = jax.random.split(key, 3)
    v = jax.random.normal(k_v, (B, dim), jnp.float32)
    e = jax.random.normal(k_e, (B, dim), jnp.float32)
    params = _init_params(k_p, dim)

    # block_b=8 exercises the multi-step pipelined batch grid (grid=(2,)).
    v_out, e_out = cross_compress_unit(v, e, params, block_b=8)
    jax.block_until_ready((v_out, e_out))

    v_ref, e_ref = _reference(v, e, params)
    assert v_out.shape == (B, dim) and e_out.shape == (B, dim)
    assert jnp.allclose(v_out, v_ref, atol=1e-5, rtol=1e-5)
    assert jnp.allclose(e_out, e_ref, atol=1e-5, rtol=1e-5)
    print("KERNEL_OK")
</pallas_src>

<mosaic_0001>
module attributes {stable_mosaic.version = 11 : i64} {
  func.func @_cross_compress_kernel(%arg0: i32, %arg1: memref<8x32xf32, #tpu.memory_space<vmem>>, %arg2: memref<8x32xf32, #tpu.memory_space<vmem>>, %arg3: memref<8x32xf32, #tpu.memory_space<vmem>>, %arg4: memref<8x32xf32, #tpu.memory_space<vmem>>, %arg5: memref<8x32xf32, #tpu.memory_space<vmem>>) attributes {dimension_semantics = [#tpu.dimension_semantics<parallel>], iteration_bounds = array<i64: 2>, scalar_prefetch = 0 : i64, scratch_operands = 0 : i64, tpu.core_type = #tpu.core_type<tc>, window_params = [{pipeline_mode = #tpu.pipeline_mode<synchronous>, transform_indices = @transform_0, window_bounds = array<i64: 8, 32>}, {transform_indices = @transform_1, window_bounds = array<i64: 8, 32>}, {transform_indices = @transform_2, window_bounds = array<i64: 8, 32>}, {transform_indices = @transform_3, window_bounds = array<i64: 8, 32>}, {transform_indices = @transform_4, window_bounds = array<i64: 8, 32>}]} {
    %c0 = arith.constant 0 : index
    %c0_0 = arith.constant 0 : index
    %0 = vector.load %arg2[%c0, %c0_0] : memref<8x32xf32, #tpu.memory_space<vmem>>, vector<8x32xf32>
    %c0_1 = arith.constant 0 : index
    %c0_2 = arith.constant 0 : index
    %1 = vector.load %arg3[%c0_1, %c0_2] : memref<8x32xf32, #tpu.memory_space<vmem>>, vector<8x32xf32>
    %c0_3 = arith.constant 0 : index
    %c0_4 = arith.constant 0 : index
    %2 = vector.load %arg1[%c0_3, %c0_4] : memref<8x32xf32, #tpu.memory_space<vmem>>, vector<8x32xf32>
    %3 = vector.extract_strided_slice %2 {offsets = [0, 0], sizes = [1, 32], strides = [1, 1]} : vector<8x32xf32> to vector<1x32xf32>
    %4 = vector.extract_strided_slice %2 {offsets = [1, 0], sizes = [1, 32], strides = [1, 1]} : vector<8x32xf32> to vector<1x32xf32>
    %5 = vector.extract_strided_slice %2 {offsets = [2, 0], sizes = [1, 32], strides = [1, 1]} : vector<8x32xf32> to vector<1x32xf32>
    %6 = vector.extract_strided_slice %2 {offsets = [3, 0], sizes = [1, 32], strides = [1, 1]} : vector<8x32xf32> to vector<1x32xf32>
    %7 = vector.extract_strided_slice %2 {offsets = [4, 0], sizes = [1, 32], strides = [1, 1]} : vector<8x32xf32> to vector<1x32xf32>
    %8 = vector.extract_strided_slice %2 {offsets = [5, 0], sizes = [1, 32], strides = [1, 1]} : vector<8x32xf32> to vector<1x32xf32>
    %9 = vector.broadcast %3 : vector<1x32xf32> to vector<8x32xf32>
    %10 = arith.mulf %1, %9 : vector<8x32xf32>
    %cst = arith.constant dense<0.000000e+00> : vector<8xf32>
    %11 = vector.multi_reduction <add>, %10, %cst [1] : vector<8x32xf32> to vector<8xf32>
    %12 = vector.shape_cast %11 : vector<8xf32> to vector<8x1xf32>
    %13 = vector.broadcast %4 : vector<1x32xf32> to vector<8x32xf32>
    %14 = arith.mulf %0, %13 : vector<8x32xf32>
    %cst_5 = arith.constant dense<0.000000e+00> : vector<8xf32>
    %15 = vector.multi_reduction <add>, %14, %cst_5 [1] : vector<8x32xf32> to vector<8xf32>
    %16 = vector.shape_cast %15 : vector<8xf32> to vector<8x1xf32>
    %17 = vector.broadcast %5 : vector<1x32xf32> to vector<8x32xf32>
    %18 = arith.mulf %1, %17 : vector<8x32xf32>
    %cst_6 = arith.constant dense<0.000000e+00> : vector<8xf32>
    %19 = vector.multi_reduction <add>, %18, %cst_6 [1] : vector<8x32xf32> to vector<8xf32>
    %20 = vector.shape_cast %19 : vector<8xf32> to vector<8x1xf32>
    %21 = vector.broadcast %6 : vector<1x32xf32> to vector<8x32xf32>
    %22 = arith.mulf %0, %21 : vector<8x32xf32>
    %cst_7 = arith.constant dense<0.000000e+00> : vector<8xf32>
    %23 = vector.multi_reduction <add>, %22, %cst_7 [1] : vector<8x32xf32> to vector<8xf32>
    %24 = vector.shape_cast %23 : vector<8xf32> to vector<8x1xf32>
    %25 = vector.broadcast %12 : vector<8x1xf32> to vector<8x32xf32>
    %26 = arith.mulf %0, %25 : vector<8x32xf32>
    %27 = vector.broadcast %16 : vector<8x1xf32> to vector<8x32xf32>
    %28 = arith.mulf %1, %27 : vector<8x32xf32>
    %29 = arith.addf %26, %28 : vector<8x32xf32>
    %30 = vector.broadcast %7 : vector<1x32xf32> to vector<8x32xf32>
    %31 = arith.addf %29, %30 : vector<8x32xf32>
    %c0_8 = arith.constant 0 : index
    %c0_9 = arith.constant 0 : index
    %32 = vector.load %arg4[%c0_8, %c0_9] : memref<8x32xf32, #tpu.memory_space<vmem>>, vector<8x32xf32>
    tpu.vector_store %arg4[%c0_8, %c0_9], %31 {strides = array<i32>} : memref<8x32xf32, #tpu.memory_space<vmem>>, vector<8x32xf32>,
    %33 = vector.broadcast %20 : vector<8x1xf32> to vector<8x32xf32>
    %34 = arith.mulf %0, %33 : vector<8x32xf32>
    %35 = vector.broadcast %24 : vector<8x1xf32> to vector<8x32xf32>
    %36 = arith.mulf %1, %35 : vector<8x32xf32>
    %37 = arith.addf %34, %36 : vector<8x32xf32>
    %38 = vector.broadcast %8 : vector<1x32xf32> to vector<8x32xf32>
    %39 = arith.addf %37, %38 : vector<8x32xf32>
    %c0_10 = arith.constant 0 : index
    %c0_11 = arith.constant 0 : index
    %40 = vector.load %arg5[%c0_10, %c0_11] : memref<8x32xf32, #tpu.memory_space<vmem>>, vector<8x32xf32>
    tpu.vector_store %arg5[%c0_10, %c0_11], %39 {strides = array<i32>} : memref<8x32xf32, #tpu.memory_space<vmem>>, vector<8x32xf32>,
    return
  }
  func.func @transform_0(%arg0: i32) -> (i32, i32) {
    %c0_i32 = arith.constant 0 : i32
    %c0_i32_0 = arith.constant 0 : i32
    %c0_i32_1 = arith.constant 0 : i32
    return %c0_i32, %c0_i32_0 : i32, i32
  }
  func.func @transform_1(%arg0: i32) -> (i32, i32) {
    %c0_i32 = arith.constant 0 : i32
    %c0_i32_0 = arith.constant 0 : i32
    return %arg0, %c0_i32 : i32, i32
  }
  func.func @transform_2(%arg0: i32) -> (i32, i32) {
    %c0_i32 = arith.constant 0 : i32
    %c0_i32_0 = arith.constant 0 : i32
    return %arg0, %c0_i32 : i32, i32
  }
  func.func @transform_3(%arg0: i32) -> (i32, i32) {
    %c0_i32 = arith.constant 0 : i32
    %c0_i32_0 = arith.constant 0 : i32
    return %arg0, %c0_i32 : i32, i32
  }
  func.func @transform_4(%arg0: i32) -> (i32, i32) {
    %c0_i32 = arith.constant 0 : i32
    %c0_i32_0 = arith.constant 0 : i32
    return %arg0, %c0_i32 : i32, i32
  }
}

</mosaic_0001>

<bundles_post_ra>
// kernel: tpu_custom_call.1
= control target key start
LH: loop header
LB: loop body
LE: loop exit
PB: predicated region body
PF: predicated region fallthrough
CT: control target
= control target key end

     0   :  { %10 = vsyncpa [#allocation3], 0  ;;  %s1037_s0 = inlined_call_operand.hbm [shape: f32[8,32], index: 0, kind: input, shape index: {}]   ;;  %s1038_s1 = inlined_call_operand.hbm [shape: f32[16,32], index: 1, kind: input, shape index: {}]   ;;  %s1039_s2 = inlined_call_operand.hbm [shape: f32[16,32], index: 2, kind: input, shape index: {}]   ;;  %s1040_s3 = inlined_call_operand.hbm [shape: f32[16,32], index: 3, kind: output, shape index: {0}]   ;;  %s1041_s4 = inlined_call_operand.hbm [shape: f32[16,32], index: 4, kind: output, shape index: {1}]  }
   0x1   :  { %11 = vsyncpa [#allocation6], 0 }
   0x2   :  { %13 = vsyncpa [#allocation6 + $0x1], 0 }
   0x3   :  { %14 = vsyncpa [#allocation4], 0 }
   0x4   :  { %16 = vsyncpa [#allocation4 + $0x1], 0 }
   0x5   :  { %17 = vsyncpa [#allocation10], 0 }
   0x6   :  { %19 = vsyncpa [#allocation10 + $0x1], 0  ;;  %s790_s15 = smov 0   ;;  %s792_s16 = smov 0  }
   0x7   :  { %s794_s17 = smov 0   ;;  %s796_s18 = smov 0  }
   0x8 LB: > { %s811_s19 = sadd.s32 1, %s758_s18   ;;  %s53_s20 = sadd.s32 1, %s754_s17  ;;  %s758_s18 = sphi %s796_s18, %s1066_s18   ;;  %s754_s17 = sphi %s794_s17, %s1065_s17   ;;  %s750_s16 = sphi %s792_s16, %s1064_s16   ;;  %s746_s15 = sphi %s790_s15, %s1063_s15  }
   0x9   : > { %s50_s21 = ssub.s32 %s758_s18, %s811_s19  ;;  %p1042_p0 = scmp.ne.s32.totalorder %s754_s17, %s750_s16 }
   0xa   : > { %p51_p1 = scmp.eq.s32.totalorder %s50_s21, 0  ;;  %p61_p2 = scmp.eq.s32.totalorder %s758_s18, 0 }
   0xb   : > { %p542_p4 = scmp.lt.s32.totalorder %s758_s18, 2  ;;  %s179_s23 = sand.u32 1, %s758_s18  }
   0xc   : > { %s822_s22 = scalar_select %p51_p1, %s754_s17, %s53_s20  }
   0xd   : > { %p62_p5 = por %p61_p2, %p1042_p0  ;;  %s181_s24 = sand.u32 1, %s754_s17  }
   0xe   : > { %s829_s25 = sshll.u32 %s181_s24, 3  ;;  %s496_s26 = sshll.u32 %s758_s18, 7 }
   0xf   : > { %s837_s29 = scalar_lea.hbm %s1038_s1, %s496_s26  ;;  %s183_s30 = scalar_lea.vmem [#allocation5], %s829_s25 }
  0x10   : > { %s190_s5 = sshll.u32 %s183_s30, 4  ;;  %p840_p6 = pnand %p542_p4, %p62_p5  ;;  %s191_s5 = int_to_ptr.vmem [resolvable:$true] %s190_s5 }
  0x11   : > { %s844_s7 = scalar_lea.sflag [#allocation6], %s179_s23  ;;  %s578_s8 = scalar_lea.hbm %s837_s29, 128 }
  0x12   : > { %p579_p7 = scmp.ne.s32.totalorder %s837_s29, %s578_s8  ;;  %p580_p8 = pneg %p840_p6 }
  0x13   : > { %s583_s11 = scalar_lea.hbm %s1038_s1, 256  ;;  %p584_p11 = scmp.lt.s32.totalorder %s837_s29, %s1038_s1 }
  0x14   : > { %p581_p9 = pnand %p580_p8, %p579_p7  ;;  %p585_p12 = scmp.lt.s32.totalorder %s583_s11, %s578_s8 }
  0x16   : > { %p582_p10 = pneg %p581_p9  ;;  %p586_p13 = por %p585_p12, %p584_p11 }
  0x18   : > { %p587_p1 = pnand %p586_p13, %p582_p10 }
  0x1a   : > { %590 = shalt.err (!%p587_p1)
}
  0x1b   : > { %s591_s14 = scalar_lea.vmem %s191_s5, 128  ;;  %s760_s20 = smov [#allocation5]  }
  0x1c   : > { %p592_p2 = scmp.ne.s32.totalorder %s191_s5, %s591_s14  ;;  %s596_s21 = sshll.u32 %s760_s20, 4  ;;  %s597_s21 = int_to_ptr.vmem [resolvable:$false] %s596_s21 }
  0x1d   : > { %s598_s23 = scalar_lea.vmem %s597_s21, 256  ;;  %p599_p7 = scmp.lt.s32.totalorder %s191_s5, %s597_s21 }
  0x1e   : > { %p594_p4 = pnand %p592_p2, %p580_p8  ;;  %p600_p9 = scmp.lt.s32.totalorder %s598_s23, %s591_s14 }
  0x20   : > { %p595_p5 = pneg %p594_p4  ;;  %p601_p3 = por %p600_p9, %p599_p7 }
  0x22   : > { %p602_p0 = pnand %p601_p3, %p595_p5 }
  0x24   : > { %605 = shalt.err (!%p602_p0)
}
  0x25   : > { %530 = dma.hbm_to_vmem [thread:$0]  (!%p840_p6), %s837_s29, 128, %s191_s5, %s844_s7  }
  0x26   : > { %s868_s24 = sadd.s32 4294967295, %s758_s18   ;;  %s491_s27 = sadd.s32 4294967294, %s758_s18  }
  0x27   : > { %p66_p0 = scmp.ne.s32.totalorder %s750_s16, %s746_s15  ;;  %p1043_p3 = scmp.eq.s32.totalorder %s868_s24, 0 }
  0x28   : > { %p116_p10 = scmp.eq.s32.totalorder %s868_s24, 1  ;;  %p122_p11 = scmp.eq.s32.totalorder %s491_s27, 1 }
  0x29   : > { %p877_p12 = por %p1043_p3, %p66_p0  ;;  %p492_p13 = scmp.ge.s32.totalorder %s758_s18, 1 }
  0x2a   : > { %p1050_p1 = scmp.ne.s32.totalorder %s754_s17, %s750_s16  ;;  %p889_p4 = por %p122_p11, %p66_p0 }
  0x2b   : > { %s1049_s28 = scalar_select %p877_p12, 1, 0 }
  0x2c   : > { %p885_p2 = por %p116_p10, %p1050_p1  ;;  %p155_p5 = scmp.lt.s32.totalorder %s758_s18, 3 }
  0x2d   : > { %s1052_s30 = scalar_select %p889_p4, 1, 0 }
  0x2e   : > { %s1051_s29 = scalar_select %p885_p2, 1, 0 }
  0x2f   : > { %s201_s5 = scalar_lea.vmem [#allocation7], %s829_s25  ;;  %s900_s11 = scalar_lea.hbm %s1039_s2, %s496_s26 }
  0x30   : > { %s208_s8 = sshll.u32 %s201_s5, 4  ;;  %p902_p7 = pnand %p492_p13, %p155_p5  ;;  %s209_s8 = int_to_ptr.vmem [resolvable:$true] %s208_s8 }
  0x31   : > { %s761_s13 = smov [#allocation2]   ;;  %s606_s25 = scalar_lea.hbm %s900_s11, 128 }
  0x32   : > { %s1053_s12 = scalar_select %p902_p7, 1, 0 }
  0x33   : > { %s168_s14 = sshll.u32 %s761_s13, 4  ;;  %p607_p0 = scmp.ne.s32.totalorder %s900_s11, %s606_s25  ;;  %s169_s14 = int_to_ptr.vmem [resolvable:$true] %s168_s14 }
  0x34   : > { %s611_s21 = scalar_lea.hbm %s1039_s2, 256  ;;  %p612_p13 = scmp.lt.s32.totalorder %s900_s11, %s1039_s2 }
  0x35   : > { %p609_p10 = pnand %p607_p0, %p580_p8  ;;  %p613_p1 = scmp.lt.s32.totalorder %s611_s21, %s606_s25 }
  0x37   : > { %p610_p11 = pneg %p609_p10  ;;  %p614_p5 = por %p613_p1, %p612_p13 }
  0x39   : > { %p615_p3 = pnand %p614_p5, %p610_p11 }
  0x3b   : > { %618 = shalt.err (!%p615_p3)
}
  0x3c   : > { %s619_s5 = scalar_lea.vmem %s209_s8, 128  ;;  %s762_s9 = smov [#allocation7]  }
  0x3d   : > { %p620_p9 = scmp.ne.s32.totalorder %s209_s8, %s619_s5  ;;  %s624_s10 = sshll.u32 %s762_s9, 4  ;;  %s625_s10 = int_to_ptr.vmem [resolvable:$false] %s624_s10 }
  0x3e   : > { %s626_s13 = scalar_lea.vmem %s625_s10, 256  ;;  %p627_p10 = scmp.lt.s32.totalorder %s209_s8, %s625_s10 }
  0x3f   : > { %p622_p4 = pnand %p620_p9, %p580_p8  ;;  %p628_p2 = scmp.lt.s32.totalorder %s626_s13, %s619_s5 }
  0x41   : > { %p623_p0 = pneg %p622_p4  ;;  %p629_p12 = por %p628_p2, %p627_p10 }
  0x43   : > { %p630_p7 = pnand %p629_p12, %p623_p0 }
  0x45   : > { %633 = shalt.err (!%p630_p7)
}
  0x46   : > { %533 = dma.hbm_to_vmem [thread:$0]  (!%p840_p6), %s900_s11, 128, %s209_s8, %s844_s7  }
  0x47   : > { %p1054_p3 = scmp.eq.s32.totalorder %s868_s24, 0  ;;  %p1055_p8 = scmp.ne.s32.totalorder %s1053_s12, 0 }
  0x48   : > { %s645_s25 = scalar_lea.vmem %s169_s14, 128  ;;  %p653_p2 = scmp.lt.s32.totalorder %s169_s14, %s169_s14 }
  0x49   : > { %p1056_p4 = pneg %p1055_p8  ;;  %p646_p13 = scmp.ne.s32.totalorder %s169_s14, %s645_s25 }
  0x4a   : > { %p654_p12 = scmp.lt.s32.totalorder %s645_s25, %s645_s25 }
  0x4b   : > { %p524_p9 = pnand %p1056_p4, %p1054_p3 }
  0x4c   : > { %p655_p7 = por %p654_p12, %p653_p2 }
  0x4d   : > { %p636_p11 = pneg %p524_p9 }
  0x4f   : > { %p648_p1 = pnand %p646_p13, %p636_p11 }
  0x51   : > { %p649_p5 = pneg %p648_p1 }
  0x53   : > { %p656_p0 = pnand %p655_p7, %p649_p5 }
  0x55   : > { %659 = shalt.err (!%p656_p0)
}
  0x56   : > { %526 = dma.hbm_to_vmem [thread:$0]  (!%p524_p9), %s1037_s0, 128, %s169_s14, [#allocation3]  }
  0x57   : > { %217 = sbr.rel (%p1055_p8) target bundleno = 292 (0x124), region = 32  ;;  %p1057_p6 = scmp.eq.s32.totalorder (!%p1055_p8), %s868_s24, 0 }
  0x5c   : > { %729 = dma.done.wait (%p1057_p6), [#allocation3], 128   ;;  %p1058_p10 = pmov %p1057_p6 }
  0x5d   : > { %s223_s7 = sand.u32 1, %s868_s24   ;;  %s943_s8 = sand.u32 1, %s750_s16  }
  0x5e   : > { %731 = vsyncadd (%p1058_p10), [#allocation3], 4294967168  ;;  %s946_s11 = sshll.u32 %s943_s8, 3  ;;  %s224_s14 = scalar_lea.sflag [#allocation6], %s223_s7 }
  0x5f   : > { %s227_s20 = scalar_lea.vmem [#allocation5], %s946_s11  ;;  %p1059_p3 = scmp.ne.s32.totalorder %s1049_s28, 0 }
  0x61   : > { %733 = dma.done.wait (%p1059_p3), %s224_s14, 256  }
  0x62   : > { %735 = vsyncadd (%p1059_p3), %s224_s14, 4294967040  ;;  %v274_v0 = vlaneseq  ;;  %s236_s12 = scalar_lea.vmem [#allocation7], %s946_s11  ;;  %v273_v7 = vld [vmem:[#allocation2] sm:$0xff]  ;;  %v271_v8 = vld [vmem:[%s227_s20] sm:$0xff]  ;;  %vm279_vm0 = vcmask 261120   ;;  %s507_s28 = sshll.u32 %s868_s24, 7 }
  0x63   : > { %v272_v6 = vld [vmem:[%s236_s12] sm:$0xff]  ;;  %s263_s21 = scalar_lea.vmem [#allocation8], %s946_s11  ;;  %s270_s27 = scalar_lea.vmem [#allocation9], %s946_s11 }
  0x64   : > { %v275_v1 = vshrl.u32 %v274_v0, 7  ;;  %s344_s23 = sshll.u32 %s263_s21, 4  ;;  %s357_s5 = sshll.u32 %s270_s27, 4  ;;  %s966_s23 = int_to_ptr.vmem [resolvable:$true] %s344_s23  ;;  %s973_s5 = int_to_ptr.vmem [resolvable:$true] %s357_s5 }
  0x65   : > { %s964_s13 = scalar_lea.hbm %s1040_s3, %s507_s28  ;;  %s971_s24 = scalar_lea.hbm %s1041_s4, %s507_s28 }
  0x66   : > { %v293_v2 = vsub.s32 2, %v275_v1  ;;  %v276_v3 = vsub.s32 0, %v275_v1  ;;  %v301_v4 = vsub.s32 3, %v275_v1  ;;  %v285_v5 = vsub.s32 1, %v275_v1  ;;  %s326_s26 = scalar_lea.sflag [#allocation4], %s943_s8  ;;  %s660_s7 = scalar_lea.vmem %s966_s23, 128 }
  0x67   : > { %v321_v21 = vsub.s32 5, %v275_v1  ;;  %v312_v23 = vsub.s32 4, %v275_v1  ;;  %p661_p8 = scmp.ne.s32.totalorder %s966_s23, %s660_s7  ;;  %p1060_p4 = scmp.ne.s32.totalorder %s1051_s29, 0 }
  0x68   : > { %v294_v9 = vrot.slane %v273_v7, %v293_v2  ;;  %v277_v10 = vrot.slane %v273_v7, %v276_v3  ;;  %v302_v11 = vrot.slane %v273_v7, %v301_v4  ;;  %v286_v12 = vrot.slane %v273_v7, %v285_v5  ;;  %s763_s11 = smov [#allocation8]  }
  0x69   : > { %v322_v22 = vrot.slane %v273_v7, %v321_v21  ;;  %v313_v24 = vrot.slane %v273_v7, %v312_v23  ;;  %p662_p9 = pnand %p661_p8, %p1060_p4  ;;  %s664_s14 = sshll.u32 %s763_s11, 4  ;;  %s665_s14 = int_to_ptr.vmem [resolvable:$false] %s664_s14 }
  0x6a   : > { %v295_v13 = vmul.f32 %v294_v9, %v272_v6  ;;  %v278_v14 = vmul.f32 %v277_v10, %v272_v6  ;;  %v303_v15 = vmul.f32 %v302_v11, %v271_v8  ;;  %v287_v16 = vmul.f32 %v286_v12, %v271_v8  ;;  %s666_s20 = scalar_lea.vmem %s665_s14, 256  ;;  %p667_p13 = scmp.lt.s32.totalorder %s966_s23, %s665_s14 }
  0x6b   : > { %p663_p11 = pneg %p662_p9  ;;  %p668_p1 = scmp.lt.s32.totalorder %s666_s20, %s660_s7 }
  0x6c   : > { %v296_v17 = vsel %vm279_vm0, %v295_v13, 0.0  ;;  %v280_v18 = vsel %vm279_vm0, %v278_v14, 0.0  ;;  %v304_v19 = vsel %vm279_vm0, %v303_v15, 0.0  ;;  %v288_v20 = vsel %vm279_vm0, %v287_v16, 0.0 }
  0x6d   : > { %297 = vadd.xlane.f32.xlu1 %v296_v17  ;;  %281 = vadd.xlane.f32.xlu0 %v280_v18  ;;  %p669_p5 = por %p668_p1, %p667_p13 }
  0x6f   : > { %p670_p2 = pnand %p669_p5, %p663_p11 }
  0x71   : > { %305 = vadd.xlane.f32.xlu1 %v304_v19  ;;  %289 = vadd.xlane.f32.xlu0 %v288_v20 }
  0xf6   : > { %v298_v25 = vpop.xlane.xlu1 %297  ;;  %v282_v26 = vpop.xlane.xlu0 %281 }
  0xf7   : > { %v316_v29 = vmul.f32 %v298_v25, %v271_v8  ;;  %v307_v30 = vmul.f32 %v282_v26, %v271_v8 }
  0xfa   : > { %v306_v27 = vpop.xlane.xlu1 %305  ;;  %v290_v28 = vpop.xlane.xlu0 %289 }
  0xfb   : > { %v317_v31 = vmul.f32 %v306_v27, %v272_v6  ;;  %v308_v32 = vmul.f32 %v290_v28, %v272_v6 }
  0xfd   : > { %v318_v33 = vadd.f32 %v317_v31, %v316_v29  ;;  %v309_v34 = vadd.f32 %v308_v32, %v307_v30 }
  0xff   : > { %v323_v35 = vadd.f32 %v322_v22, %v318_v33  ;;  %v314_v36 = vadd.f32 %v313_v24, %v309_v34 }
 0x101   : > { %315 = vst.msk [vmem:[%s263_s21] sm:$0xff] %vm279_vm0, %v314_v36  ;;  %324 = vst.msk [vmem:[%s270_s27] sm:$0xff] %vm279_vm0, %v323_v35 }
 0x102   : > { %673 = shalt.err (!%p670_p2)
}
 0x103   : > { %s674_s12 = scalar_lea.hbm %s964_s13, 128  ;;  %s678_s27 = scalar_lea.hbm %s1040_s3, 256 }
 0x104   : > { %p675_p12 = scmp.ne.s32.totalorder %s964_s13, %s674_s12  ;;  %p679_p6 = scmp.lt.s32.totalorder %s964_s13, %s1040_s3 }
 0x105   : > { %p680_p10 = scmp.lt.s32.totalorder %s678_s27, %s674_s12 }
 0x106   : > { %p676_p7 = pnand %p675_p12, %p1060_p4 }
 0x107   : > { %p681_p3 = por %p680_p10, %p679_p6 }
 0x108   : > { %p677_p0 = pneg %p676_p7 }
 0x10a   : > { %p682_p8 = pnand %p681_p3, %p677_p0 }
 0x10c   : > { %685 = shalt.err (!%p682_p8)
}
 0x10d   : > { %519 = dma.vmem_to_hbm [thread:$0]  (%p1060_p4), %s966_s23, 128, %s964_s13, %s326_s26  }
 0x10e   : > { %s331_s25 = scalar_lea.sflag [#allocation10], %s943_s8  ;;  %s686_s6 = scalar_lea.vmem %s973_s5, 128 }
 0x10f   : > { %p687_p9 = scmp.ne.s32.totalorder %s973_s5, %s686_s6  ;;  %s764_s7 = smov [#allocation9]  }
 0x110   : > { %s690_s11 = sshll.u32 %s764_s7, 4  ;;  %s691_s11 = int_to_ptr.vmem [resolvable:$false] %s690_s11 }
 0x111   : > { %p688_p11 = pnand %p687_p9, %p1060_p4  ;;  %s692_s14 = scalar_lea.vmem %s691_s11, 256 }
 0x112   : > { %p693_p1 = scmp.lt.s32.totalorder %s973_s5, %s691_s11  ;;  %p694_p5 = scmp.lt.s32.totalorder %s692_s14, %s686_s6 }
 0x113   : > { %p689_p13 = pneg %p688_p11 }
 0x114   : > { %p695_p2 = por %p694_p5, %p693_p1 }
 0x116   : > { %p696_p12 = pnand %p695_p2, %p689_p13 }
 0x118   : > { %699 = shalt.err (!%p696_p12)
}
 0x119   : > { %s700_s23 = scalar_lea.hbm %s971_s24, 128  ;;  %s704_s26 = scalar_lea.hbm %s1041_s4, 256 }
 0x11a   : > { %p701_p7 = scmp.ne.s32.totalorder %s971_s24, %s700_s23  ;;  %p705_p10 = scmp.lt.s32.totalorder %s971_s24, %s1041_s4 }
 0x11b   : > { %p706_p3 = scmp.lt.s32.totalorder %s704_s26, %s700_s23 }
 0x11c   : > { %p702_p0 = pnand %p701_p7, %p1060_p4 }
 0x11d   : > { %p707_p8 = por %p706_p3, %p705_p10 }
 0x11e   : > { %p703_p6 = pneg %p702_p0 }
 0x120   : > { %p708_p9 = pnand %p707_p8, %p703_p6 }
 0x122   : > { %711 = shalt.err (!%p708_p9)
}
 0x123   : > { %520 = dma.vmem_to_hbm [thread:$0]  (%p1060_p4), %s973_s5, 128, %s971_s24, %s331_s25  }
 0x124 PF: > { %s369_s28 = sand.u32 1, %s746_s15   ;;  %p1061_p11 = scmp.ne.s32.totalorder %s1052_s30, 0 }
 0x125   : > { %p1062_p13 = scmp.ge.s32.totalorder %s758_s18, 2  ;;  %s370_s21 = scalar_lea.sflag [#allocation4], %s369_s28 }
 0x127   : > { %p535_p1 = pnand %p1062_p13, %p1061_p11 }
 0x129   : > { %p536_p5 = pneg %p535_p1 }
 0x12b   : > { %737 = dma.done.wait (%p536_p5), %s370_s21, 128  }
 0x12c   : > { %739 = vsyncadd (%p536_p5), %s370_s21, 4294967168  ;;  %s379_s27 = scalar_lea.sflag [#allocation10], %s369_s28 }
 0x12d   : > { %741 = dma.done.wait (%p536_p5), %s379_s27, 128  }
 0x12e   : > { %743 = vsyncadd (%p536_p5), %s379_s27, 4294967168  ;;  %p22_p4 = scmp.ge.s32.totalorder %s811_s19, 4   ;;  %s1063_s15 = smov %s750_s16 }
 0x12f   : > { %s1064_s16 = smov %s754_s17  ;;  %s1065_s17 = smov %s822_s22 }
 0x130   : > { %s1066_s18 = smov %s811_s19  ;;  %24 = sbr.rel (!%p22_p4) target bundleno = 8 (0x8), region = 110 }
 0x135   :  { %384 = vsyncpa [#allocation3], 1 }
 0x136   :  { %386 = vsyncpa [#allocation3 + $0x1], 1 }
 0x137   :  { %387 = vsyncpa [#allocation6], 1 }
 0x138   :  { %389 = vsyncpa [#allocation6 + $0x1], 1 }
 0x139   :  { %390 = vsyncpa [#allocation4], 1 }
 0x13a   :  { %392 = vsyncpa [#allocation4 + $0x1], 1 }
 0x13b   :  { %393 = vsyncpa [#allocation10], 1 }
 0x13c   :  { %395 = vsyncpa [#allocation10 + $0x1], 1 }

</bundles_post_ra>
